<compile_context>
chip_gen: v5e
topology: v5e:2x2
jax: 0.10.0
libtpu: 0.0.40
codegen_flags: <defaults>
</compile_context>

<pallas_src>
import functools

import jax
import jax.numpy as jnp
from jax.experimental import pallas as pl
from jax.experimental.pallas import tpu as pltpu

_MiB = 1024 * 1024
_X_RESIDENT_BYTES = 4 * _MiB      # keep x fully VMEM-resident below this size
_FUSED_VMEM_BYTES = 12 * _MiB     # use the fused single-kernel path below this
_NEG_SLOPE = 0.01                 # nn.LeakyReLU() default


# ---------------------------------------------------------------------------
# Fused small-graph kernel: out = (adj @ leaky_relu((adj @ x) @ W1t)) @ W2t
# Everything is VMEM-resident; adj is read once; h never touches HBM.
# ---------------------------------------------------------------------------
def _fused_decoder_kernel(adj_ref, x_ref, w1_ref, w2_ref, out_ref):
    adj = adj_ref[...]
    t = jnp.dot(adj, x_ref[...], preferred_element_type=jnp.float32)
    # Feed the f32 product directly into the (tiny) weight matmul.
    h = jnp.dot(t, w1_ref[...].astype(jnp.float32),
                preferred_element_type=jnp.float32)
    h = jnp.where(h > 0, h, _NEG_SLOPE * h)            # LeakyReLU in f32
    t2 = jnp.dot(adj, h.astype(adj.dtype), preferred_element_type=jnp.float32)
    y = jnp.dot(t2, w2_ref[...].astype(jnp.float32),
                preferred_element_type=jnp.float32)
    out_ref[...] = y.astype(out_ref.dtype)


def _fused_vmem_need(n_p, d_p, h_p, f_p, itm, out_itm):
    operands = (n_p * n_p + n_p * d_p + d_p * h_p + h_p * f_p) * itm \
        + n_p * f_p * out_itm
    intermediates = n_p * (d_p + h_p + h_p + f_p) * 4       # t, h, t2, y (f32)
    return operands + intermediates


def _fused_decoder(adj_p, x_p, w1t_p, w2t_p, *, out_dtype):
    n_p, d_p = x_p.shape
    h_p = w1t_p.shape[1]
    f_p = w2t_p.shape[1]
    itm = jnp.dtype(adj_p.dtype).itemsize
    out_itm = jnp.dtype(out_dtype).itemsize

    flops = (2 * n_p * n_p * d_p + 2 * n_p * d_p * h_p
             + 2 * n_p * n_p * h_p + 2 * n_p * h_p * f_p)
    bytes_accessed = (n_p * n_p + n_p * d_p + d_p * h_p + h_p * f_p) * itm \
        + n_p * f_p * out_itm
    cost = pl.CostEstimate(flops=flops, transcendentals=0,
                           bytes_accessed=bytes_accessed)

    vmem_need = _fused_vmem_need(n_p, d_p, h_p, f_p, itm, out_itm)
    vmem_limit = int(min(48 * _MiB, max(16 * _MiB, 2 * vmem_need)))

    vmem_spec = pl.BlockSpec(memory_space=pltpu.MemorySpace.VMEM)
    return pl.pallas_call(
        _fused_decoder_kernel,
        out_shape=jax.ShapeDtypeStruct((n_p, f_p), out_dtype),
        in_specs=[vmem_spec, vmem_spec, vmem_spec, vmem_spec],
        out_specs=vmem_spec,
        compiler_params=pltpu.CompilerParams(vmem_limit_bytes=vmem_limit),
        cost_estimate=cost,
    )(adj_p, x_p, w1t_p, w2t_p)


# ---------------------------------------------------------------------------
# Tiled per-layer kernel (large N): y = act( (adj @ x) @ Wt )
# grid = (row_tiles, k_tiles); K (reduction over adj columns) is the last axis.
# ---------------------------------------------------------------------------
def _gcn_layer_kernel(adj_ref, x_ref, w_ref, out_ref, acc_ref, *,
                      tk, x_resident, negative_slope):
    k = pl.program_id(1)

    @pl.when(k == 0)
    def _init():
        acc_ref[...] = jnp.zeros_like(acc_ref)

    if x_resident:
        # x is the whole padded array, resident in VMEM; slice the K rows here.
        row0 = pl.multiple_of(k * tk, tk)
        x_blk = x_ref[pl.ds(row0, tk), :]
    else:
        x_blk = x_ref[...]
    acc_ref[...] += jnp.dot(adj_ref[...], x_blk,
                            preferred_element_type=jnp.float32)

    @pl.when(k == pl.num_programs(1) - 1)
    def _finalize():
        # Feed the f32 accumulator straight into the (tiny) weight matmul --
        # no bf16 round-trip of the partial sums.
        y = jnp.dot(acc_ref[...], w_ref[...].astype(jnp.float32),
                    preferred_element_type=jnp.float32)
        if negative_slope is not None:
            y = jnp.where(y > 0, y, negative_slope * y)
        out_ref[...] = y.astype(out_ref.dtype)


def _pick_tiles(n_p):
    """Pick (tm, tk): biggest 128-multiples dividing n_p; keep >= 2 row tiles."""
    def largest_divisor(cands):
        for c in cands:
            if c <= n_p and n_p % c == 0:
                return c
        return 128

    tm = largest_divisor((2048, 1024, 512, 256, 128))
    # Keep at least 2 tiles on the "parallel" row axis whenever n_p allows it,
    # so both TensorCores of a v7x chip get work.
    while tm > 128 and n_p // tm < 2:
        tm //= 2
    tk = largest_divisor((1024, 512, 256, 128))
    return tm, tk


def _gcn_layer(adj_p, x_p, w_p, *, negative_slope, out_dtype):
    """adj_p: (Np, Np), x_p: (Np, Din), w_p: (Din, Dout); all 128-aligned."""
    n_p, d_in = x_p.shape
    d_out = w_p.shape[1]
    tm, tk = _pick_tiles(n_p)
    grid = (n_p // tm, n_p // tk)

    itm = jnp.dtype(adj_p.dtype).itemsize
    out_itm = jnp.dtype(out_dtype).itemsize

    # Keep the full x resident in VMEM (constant block index -> DMA'd once)
    # whenever it is small; fall back to re-streaming per K tile for huge N.
    x_resident = n_p * d_in * itm <= _X_RESIDENT_BYTES
    if x_resident:
        x_spec = pl.BlockSpec((n_p, d_in), lambda i, k: (0, 0))
        x_passes = 1
    else:
        x_spec = pl.BlockSpec((tk, d_in), lambda i, k: (k, 0))
        x_passes = n_p // tm                 # x is re-read once per row tile

    flops = 2 * n_p * n_p * d_in + 2 * n_p * d_in * d_out
    bytes_accessed = (n_p * n_p + x_passes * n_p * d_in + d_in * d_out) * itm \
        + n_p * d_out * out_itm
    cost = pl.CostEstimate(flops=flops, transcendentals=0,
                           bytes_accessed=bytes_accessed)

    # Double-buffered operands + output tile + f32 accumulator, with 2x
    # headroom; clamp to [16 MiB, 48 MiB] so it is safe even on v7x (64 MiB).
    # NOTE: the weight / resident-x block indices are constant so they are only
    # DMA'd once; their second pipeline buffer is a small, accepted VMEM cost.
    x_buf_bytes = (n_p if x_resident else tk) * d_in * itm
    vmem_need = (2 * tm * tk * itm            # adj tile
                 + 2 * x_buf_bytes            # x
                 + 2 * d_in * d_out * itm     # weight
                 + 2 * tm * d_out * out_itm   # output tile
                 + tm * d_in * 4)             # f32 accumulator
    vmem_limit = int(min(48 * _MiB, max(16 * _MiB, 2 * vmem_need)))

    kernel = functools.partial(_gcn_layer_kernel, tk=tk,
                               x_resident=x_resident,
                               negative_slope=negative_slope)

    return pl.pallas_call(
        kernel,
        out_shape=jax.ShapeDtypeStruct((n_p, d_out), out_dtype),
        grid=grid,
        in_specs=[
            pl.BlockSpec((tm, tk), lambda i, k: (i, k)),       # adj tile
            x_spec,                                            # x (resident/streamed)
            pl.BlockSpec((d_in, d_out), lambda i, k: (0, 0)),  # full weight
        ],
        out_specs=pl.BlockSpec((tm, d_out), lambda i, k: (i, 0)),
        scratch_shapes=[pltpu.VMEM((tm, d_in), jnp.float32)],
        compiler_params=pltpu.CompilerParams(
            dimension_semantics=("parallel", "arbitrary"),
            vmem_limit_bytes=vmem_limit,
        ),
        cost_estimate=cost,
    )(adj_p, x_p, w_p)


# ---------------------------------------------------------------------------
# Operand preparation (hoistable out of the hot path) and public forward.
#   w1 = gc1.weight (hiddendim, outputdim), w2 = gc2.weight (feat_size, hiddendim)
# ---------------------------------------------------------------------------
def _round_up(v, m):
    return ((v + m - 1) // m) * m


def _pad2d(a, rows, cols):
    return jnp.pad(a, ((0, rows - a.shape[0]), (0, cols - a.shape[1])))


def prepare_attr_decoder(adj, w1, w2, *, compute_dtype=jnp.bfloat16):
    """Pad to 128-aligned shapes and cast MXU operands to bf16.

    adj and the weights are (quasi-)static in a GCN decoder: call this once and
    reuse the results across forward passes so the pad+cast (an extra HBM
    read/write of adj) never sits on the per-call hot path.
    """
    N = adj.shape[0]
    hiddendim, outputdim = w1.shape
    feat_size = w2.shape[0]

    n_p = _round_up(max(N, 1), 128)
    d_p = _round_up(outputdim, 128)
    h_p = _round_up(hiddendim, 128)
    f_p = _round_up(feat_size, 128)

    adj_p = _pad2d(adj, n_p, n_p).astype(compute_dtype)        # (Np, Np)
    w1t_p = _pad2d(w1.T, d_p, h_p).astype(compute_dtype)       # (Dp, Hp)
    w2t_p = _pad2d(w2.T, h_p, f_p).astype(compute_dtype)       # (Hp, Fp)
    return adj_p, w1t_p, w2t_p


def attr_decoder_forward(x, adj, w1, w2, *, compute_dtype=jnp.bfloat16,
                         fuse_max_n=1024):
    """Matches attr_Decoder.forward(x, adj) (dropout is not applied in forward)."""
    N, _ = x.shape
    feat_size = w2.shape[0]
    out_dtype = x.dtype

    adj_p, w1t_p, w2t_p = prepare_attr_decoder(adj, w1, w2,
                                               compute_dtype=compute_dtype)
    n_p = adj_p.shape[0]
    d_p, h_p = w1t_p.shape
    f_p = w2t_p.shape[1]
    x_p = _pad2d(x, n_p, d_p).astype(compute_dtype)            # (Np, Dp)

    itm = jnp.dtype(compute_dtype).itemsize
    out_itm = jnp.dtype(out_dtype).itemsize
    fused_ok = (n_p <= fuse_max_n
                and _fused_vmem_need(n_p, d_p, h_p, f_p, itm, out_itm)
                <= _FUSED_VMEM_BYTES)

    if fused_ok:
        # Small-graph fast path: one kernel, adj read once, h never hits HBM.
        out_p = _fused_decoder(adj_p, x_p, w1t_p, w2t_p, out_dtype=out_dtype)
    else:
        # Layer 1: LeakyReLU((adj @ x) @ W1^T) -> keep bf16 for layer-2 input.
        h = _gcn_layer(adj_p, x_p, w1t_p, negative_slope=_NEG_SLOPE,
                       out_dtype=compute_dtype)                # (Np, Hp)
        # Layer 2: (adj @ h) @ W2^T -> final output in input dtype.
        out_p = _gcn_layer(adj_p, h, w2t_p, negative_slope=None,
                           out_dtype=out_dtype)                # (Np, Fp)

    return out_p[:N, :feat_size]


# ---------------------------------------------------------------------------
# Reference & self-test
# ---------------------------------------------------------------------------
def _reference(x, adj, w1, w2):
    h = adj @ x @ w1.T
    h = jnp.where(h > 0, h, _NEG_SLOPE * h)
    return adj @ h @ w2.T


def _check(out, ref, name):
    assert out.shape == ref.shape, f"{name}: shape {out.shape} != {ref.shape}"
    out = out.astype(jnp.float32)
    err = float(jnp.max(jnp.abs(out - ref)))
    scale = float(jnp.max(jnp.abs(ref))) + 1e-6
    # bf16 MXU operands with f32 accumulation -> bf16-appropriate tolerance.
    assert err <= 5e-2 * scale + 1e-2, f"{name}: max err {err} (scale {scale})"


if __name__ == "__main__":
    # attr_Decoder(feat_size=64, hiddendim=32, outputdim=16, dropout=0.1)
    feat_size, hiddendim, outputdim = 64, 32, 16

    key = jax.random.PRNGKey(0)
    k1, k2, kx1, ka1, kx2, ka2 = jax.random.split(key, 6)

    # Deterministic parameter init (Kaiming-uniform-like bounds, as nn.Linear).
    bound1 = 1.0 / (outputdim ** 0.5)
    bound2 = 1.0 / (hiddendim ** 0.5)
    w1 = jax.random.uniform(k1, (hiddendim, outputdim), jnp.float32,
                            minval=-bound1, maxval=bound1)     # gc1.weight
    w2 = jax.random.uniform(k2, (feat_size, hiddendim), jnp.float32,
                            minval=-bound2, maxval=bound2)     # gc2.weight

    # Case 1: tiny graph (the shipped config) -> fused single-kernel path.
    N1 = 8
    x1 = jax.random.normal(kx1, (N1, outputdim), jnp.float32)
    adj1 = jax.random.uniform(ka1, (N1, N1), jnp.float32)
    out1 = jax.block_until_ready(attr_decoder_forward(x1, adj1, w1, w2))
    _check(out1, _reference(x1, adj1, w1, w2), "fused")

    # Case 2: force the tiled path (multi-tile grid, VMEM-resident x, K-axis
    # accumulation) so it is exercised as well.
    N2 = 300
    x2 = jax.random.normal(kx2, (N2, outputdim), jnp.float32)
    adj2 = jax.random.uniform(ka2, (N2, N2), jnp.float32)
    out2 = jax.block_until_ready(
        attr_decoder_forward(x2, adj2, w1, w2, fuse_max_n=0))
    _check(out2, _reference(x2, adj2, w1, w2), "tiled")

    print("KERNEL_OK")
</pallas_src>

<mosaic_0001>
module attributes {stable_mosaic.version = 11 : i64} {
  func.func @_fused_decoder_kernel(%arg0: memref<128x128xbf16, #tpu.memory_space<vmem>>, %arg1: memref<128x128xbf16, #tpu.memory_space<vmem>>, %arg2: memref<128x128xbf16, #tpu.memory_space<vmem>>, %arg3: memref<128x128xbf16, #tpu.memory_space<vmem>>, %arg4: memref<128x128xf32, #tpu.memory_space<vmem>>) attributes {dimension_semantics = [], scalar_prefetch = 0 : i64, scratch_operands = 0 : i64, tpu.core_type = #tpu.core_type<tc>} {
    %c0 = arith.constant 0 : index
    %c0_0 = arith.constant 0 : index
    %0 = vector.load %arg0[%c0, %c0_0] : memref<128x128xbf16, #tpu.memory_space<vmem>>, vector<128x128xbf16>
    %c0_1 = arith.constant 0 : index
    %c0_2 = arith.constant 0 : index
    %1 = vector.load %arg1[%c0_1, %c0_2] : memref<128x128xbf16, #tpu.memory_space<vmem>>, vector<128x128xbf16>
    %cst = arith.constant dense<0.000000e+00> : vector<128x128xf32>
    %2 = tpu.matmul %0, %1, %cst {dimension_numbers = #tpu.dot_dimension_numbers<[1], [0], [0], [1], [0, 0, 1, 1], [], []>} : vector<128x128xbf16>, vector<128x128xbf16>, vector<128x128xf32> -> vector<128x128xf32>
    %c0_3 = arith.constant 0 : index
    %c0_4 = arith.constant 0 : index
    %3 = vector.load %arg2[%c0_3, %c0_4] : memref<128x128xbf16, #tpu.memory_space<vmem>>, vector<128x128xbf16>
    %4 = arith.extf %3 : vector<128x128xbf16> to vector<128x128xf32>
    %cst_5 = arith.constant dense<0.000000e+00> : vector<128x128xf32>
    %5 = tpu.matmul %2, %4, %cst_5 {dimension_numbers = #tpu.dot_dimension_numbers<[1], [0], [0], [1], [0, 0, 1, 1], [], []>} : vector<128x128xf32>, vector<128x128xf32>, vector<128x128xf32> -> vector<128x128xf32>
    %cst_6 = arith.constant 0.000000e+00 : f32
    %6 = vector.broadcast %cst_6 : f32 to vector<128x128xf32>
    %7 = arith.cmpf ogt, %5, %6 : vector<128x128xf32>
    %cst_7 = arith.constant 0.00999999977 : f32
    %8 = vector.broadcast %cst_7 : f32 to vector<128x128xf32>
    %9 = arith.mulf %8, %5 : vector<128x128xf32>
    %10 = arith.select %7, %5, %9 : vector<128x128xi1>, vector<128x128xf32>
    %11 = arith.truncf %10 : vector<128x128xf32> to vector<128x128xbf16>
    %cst_8 = arith.constant dense<0.000000e+00> : vector<128x128xf32>
    %12 = tpu.matmul %0, %11, %cst_8 {dimension_numbers = #tpu.dot_dimension_numbers<[1], [0], [0], [1], [0, 0, 1, 1], [], []>} : vector<128x128xbf16>, vector<128x128xbf16>, vector<128x128xf32> -> vector<128x128xf32>
    %c0_9 = arith.constant 0 : index
    %c0_10 = arith.constant 0 : index
    %13 = vector.load %arg3[%c0_9, %c0_10] : memref<128x128xbf16, #tpu.memory_space<vmem>>, vector<128x128xbf16>
    %14 = arith.extf %13 : vector<128x128xbf16> to vector<128x128xf32>
    %cst_11 = arith.constant dense<0.000000e+00> : vector<128x128xf32>
    %15 = tpu.matmul %12, %14, %cst_11 {dimension_numbers = #tpu.dot_dimension_numbers<[1], [0], [0], [1], [0, 0, 1, 1], [], []>} : vector<128x128xf32>, vector<128x128xf32>, vector<128x128xf32> -> vector<128x128xf32>
    %c0_12 = arith.constant 0 : index
    %c0_13 = arith.constant 0 : index
    %16 = vector.load %arg4[%c0_12, %c0_13] : memref<128x128xf32, #tpu.memory_space<vmem>>, vector<128x128xf32>
    tpu.vector_store %arg4[%c0_12, %c0_13], %15 {strides = array<i32>} : memref<128x128xf32, #tpu.memory_space<vmem>>, vector<128x128xf32>,
    return
  }
}

</mosaic_0001>

<bundles_post_ra>
// kernel: tpu_custom_call.1
= control target key start
LH: loop header
LB: loop body
LE: loop exit
PB: predicated region body
PF: predicated region fallthrough
CT: control target
= control target key end

     0   :  { %9 = vsyncpa [#allocation3], 0  ;;  %s982_s0 = inlined_call_operand.hbm [shape: bf16[128,128], index: 0, kind: input, shape index: {}]   ;;  %s983_s1 = inlined_call_operand.hbm [shape: bf16[128,128], index: 1, kind: input, shape index: {}]   ;;  %s984_s2 = inlined_call_operand.hbm [shape: bf16[128,128], index: 2, kind: input, shape index: {}]   ;;  %s985_s3 = inlined_call_operand.hbm [shape: bf16[128,128], index: 3, kind: input, shape index: {}]   ;;  %s986_s4 = inlined_call_operand.hbm [shape: f32[128,128], index: 4, kind: output, shape index: {}]  }
   0x1   :  { %10 = vsyncpa [#allocation6], 0 }
   0x2   :  { %11 = vsyncpa [#allocation9], 0 }
   0x3   :  { %12 = vsyncpa [#allocation4], 0  ;;  %s30_s17 = sshll.u32 %s983_s1, 4  ;;  %s889_s18 = smov [#allocation5]   ;;  %s31_s17 = int_to_ptr.hbm [resolvable:$true] %s30_s17 }
   0x4   :  { %s32_s19 = sshll.u32 %s889_s18, 4  ;;  %s17_s22 = sshll.u32 %s982_s0, 4  ;;  %s33_s19 = int_to_ptr.vmem [resolvable:$true] %s32_s19  ;;  %s18_s22 = int_to_ptr.hbm [resolvable:$true] %s17_s22 }
   0x5   :  { %s890_s23 = smov 64   ;;  %s891_s24 = smov 4  }
   0x6   :  { %38 = dma.hbm_to_vmem [thread:$0]  %s31_s17, 1024, %s33_s19, [#allocation6], %s890_s23, %s890_s23, %s891_s24  }
   0x7   :  { %s892_s25 = smov [#allocation2]   ;;  %s43_s29 = sshll.u32 %s984_s2, 4  ;;  %s44_s29 = int_to_ptr.hbm [resolvable:$true] %s43_s29 }
   0x8   :  { %s19_s26 = sshll.u32 %s892_s25, 4  ;;  %s56_s5 = sshll.u32 %s985_s3, 4  ;;  %s20_s26 = int_to_ptr.vmem [resolvable:$true] %s19_s26  ;;  %s57_s5 = int_to_ptr.hbm [resolvable:$true] %s56_s5 }
   0x9   :  { %25 = dma.hbm_to_vmem [thread:$0]  %s18_s22, 1024, %s20_s26, [#allocation3], %s890_s23, %s890_s23, %s891_s24  }
   0xa   :  { %s893_s6 = smov [#allocation7]   ;;  %s894_s0 = smov [#allocation8]  }
   0xb   :  { %s45_s7 = sshll.u32 %s893_s6, 4  ;;  %s58_s8 = sshll.u32 %s894_s0, 4  ;;  %s46_s7 = int_to_ptr.vmem [resolvable:$true] %s45_s7  ;;  %s59_s8 = int_to_ptr.vmem [resolvable:$true] %s58_s8 }
   0xc   :  { %51 = dma.hbm_to_vmem [thread:$0]  %s44_s29, 1024, %s46_s7, [#allocation6], %s890_s23, %s890_s23, %s891_s24  }
   0xd   :  { %64 = dma.hbm_to_vmem [thread:$0]  %s57_s5, 1024, %s59_s8, [#allocation9], %s890_s23, %s890_s23, %s891_s24  }
   0xe   :  { %881 = dma.done.wait [#allocation3], 1024  }
   0xf   :  { %882 = vsyncadd [#allocation3], 4294966272 }
  0x10   :  { %883 = dma.done.wait [#allocation6], 2048  }
  0x11   :  { %884 = vsyncadd [#allocation6], 4294965248 }
  0x12   :  { %885 = dma.done.wait [#allocation9], 1024  }
  0x13   :  { %886 = vsyncadd [#allocation9], 4294966272  ;;  %v673_v0 = vld [vmem:[#allocation5 + $0x38] sm:$0xff]  ;;  %v672_v1 = vld [vmem:[#allocation5 + $0x30] sm:$0xff]  ;;  %s895_s2 = smov [#allocation10]   ;;  %s579_s11 = sshll.u32 %s986_s4, 4  ;;  %s580_s11 = int_to_ptr.hbm [resolvable:$true] %s579_s11 }
  0x14   :  { %209 = vmatpush.bf16.msra.mxu0 %v673_v0  ;;  %v671_v2 = vld [vmem:[#allocation5 + $0x28] sm:$0xff]  ;;  %v670_v3 = vld [vmem:[#allocation5 + $0x20] sm:$0xff]  ;;  %v669_v4 = vld [vmem:[#allocation5 + $0x18] sm:$0xff]  ;;  %s577_s3 = sshll.u32 %s895_s2, 4  ;;  %s896_s12 = smov 128   ;;  %s578_s3 = int_to_ptr.vmem [resolvable:$true] %s577_s3 }
  0x15   :  { %v668_v5 = vld [vmem:[#allocation5 + $0x10] sm:$0xff]  ;;  %v667_v6 = vld [vmem:[#allocation5 + $0x8] sm:$0xff]  ;;  %v666_v7 = vld [vmem:[#allocation5] sm:$0xff]  ;;  %s897_s13 = smov 8  }
  0x16   :  { %v935_v8 = vld [vmem:[#allocation2] sm:$0xff]  ;;  %v938_v9 = vld [vmem:[#allocation2 + $0x8] sm:$0xff]  ;;  %v941_v10 = vld [vmem:[#allocation2 + $0x10] sm:$0xff] }
  0x17   :  { %v944_v11 = vld [vmem:[#allocation2 + $0x18] sm:$0xff]  ;;  %v947_v14 = vld [vmem:[#allocation2 + $0x20] sm:$0xff]  ;;  %v743_v16 = vld [vmem:[#allocation7 + $0x30] sm:$0xff]  }
  0x18   :  { %210 = vmatpush.bf16.msra.mxu0 %v672_v1  ;;  %v744_v12 = vld [vmem:[#allocation7 + $0x38] sm:$0xff]   ;;  %v742_v17 = vld [vmem:[#allocation7 + $0x28] sm:$0xff]   ;;  %v701_v18 = vunpack.c.h.bf16 %v743_v16  ;;  %v700_v19 = vunpack.c.l.bf16 %v743_v16  ;;  %v741_v21 = vld [vmem:[#allocation7 + $0x20] sm:$0xff]  }
  0x19   :  { %v705_v13 = vunpack.c.h.bf16 %v744_v12  ;;  %v704_v15 = vunpack.c.l.bf16 %v744_v12  ;;  %v697_v20 = vunpack.c.h.bf16 %v742_v17  ;;  %v696_v22 = vunpack.c.l.bf16 %v742_v17  ;;  %v740_v24 = vld [vmem:[#allocation7 + $0x18] sm:$0xff]   ;;  %v950_v27 = vld [vmem:[#allocation2 + $0x28] sm:$0xff]  ;;  %v739_v29 = vld [vmem:[#allocation7 + $0x10] sm:$0xff]  }
  0x1a   :  { %v693_v23 = vunpack.c.h.bf16 %v741_v21  ;;  %v692_v25 = vunpack.c.l.bf16 %v741_v21  ;;  %v689_v26 = vunpack.c.h.bf16 %v740_v24  ;;  %v688_v28 = vunpack.c.l.bf16 %v740_v24  ;;  %v738_v30 = vld [vmem:[#allocation7 + $0x8] sm:$0xff]   ;;  %v675_v34 = vld [vmem:[#allocation7] sm:$0xff]   ;;  %v953_v38 = vld [vmem:[#allocation2 + $0x30] sm:$0xff] }
  0x1b   :  { %290 = vmatpush.msra.mxu1 %v705_v13  ;;  %v685_v31 = vunpack.c.h.bf16 %v739_v29  ;;  %v684_v32 = vunpack.c.l.bf16 %v739_v29  ;;  %v681_v33 = vunpack.c.h.bf16 %v738_v30  ;;  %v680_v35 = vunpack.c.l.bf16 %v738_v30  ;;  %v956_v39 = vld [vmem:[#allocation2 + $0x38] sm:$0xff] }
  0x1c   :  { %211 = vmatpush.bf16.msra.mxu0 %v671_v2  ;;  %v677_v36 = vunpack.c.h.bf16 %v675_v34  ;;  %v676_v37 = vunpack.c.l.bf16 %v675_v34 }
  0x1d   :  { %291 = vmatpush.msra.mxu1 %v704_v15 }
  0x1f   :  { %292 = vmatpush.msra.mxu1 %v701_v18 }
  0x20   :  { %212 = vmatpush.bf16.msra.mxu0 %v670_v3 }
  0x21   :  { %293 = vmatpush.msra.mxu1 %v700_v19 }
  0x23   :  { %294 = vmatpush.msra.mxu1 %v697_v20 }
  0x24   :  { %213 = vmatpush.bf16.msra.mxu0 %v669_v4 }
  0x25   :  { %295 = vmatpush.msra.mxu1 %v696_v22 }
  0x27   :  { %296 = vmatpush.msra.mxu1 %v693_v23 }
  0x28   :  { %214 = vmatpush.bf16.msra.mxu0 %v668_v5 }
  0x29   :  { %297 = vmatpush.msra.mxu1 %v692_v25 }
  0x2b   :  { %298 = vmatpush.msra.mxu1 %v689_v26 }
  0x2c   :  { %215 = vmatpush.bf16.msra.mxu0 %v667_v6 }
  0x2d   :  { %299 = vmatpush.msra.mxu1 %v688_v28 }
  0x2f   :  { %300 = vmatpush.msra.mxu1 %v685_v31 }
  0x30   :  { %216 = vmatpush.bf16.msra.mxu0 %v666_v7 }
  0x31   :  { %301 = vmatpush.msra.mxu1 %v684_v32 }
  0x33   :  { %217 = vmatmul.bf16.vlgmr.msra.gmra.mxu0 %v935_v8  ;;  %302 = vmatpush.msra.mxu1 %v681_v33 }
  0x35   :  { %303 = vmatpush.msra.mxu1 %v680_v35 }
  0x37   :  { %304 = vmatpush.msra.mxu1 %v677_v36 }
  0x39   :  { %305 = vmatpush.msra.mxu1 %v676_v37 }
  0x43   :  { %222 = vmatmul.bf16.gmra.mxu0 %v938_v9 }
  0x53   :  { %227 = vmatmul.bf16.gmra.mxu0 %v941_v10 }
  0x63   :  { %232 = vmatmul.bf16.gmra.mxu0 %v944_v11 }
  0x73   :  { %237 = vmatmul.bf16.gmra.mxu0 %v947_v14 }
  0x83   :  { %242 = vmatmul.bf16.gmra.mxu0 %v950_v27 }
  0x93   :  { %247 = vmatmul.bf16.gmra.mxu0 %v953_v38 }
  0xa3   :  { %252 = vmatmul.bf16.gmra.mxu0 %v956_v39 }
  0xb0   :  { %v218_v40 = vpop.f32.mrf.mxu0 }
  0xb1   :  { %306 = vmatmul.f32.vlgmr.msra.gmra.mxu1 %v218_v40 }
  0xb8   :  { %v220_v41 = vpop.f32.mrf.mxu0 }
  0xb9   :  { %309 = vmatmul.f32.gmra.mxu1 %v220_v41 }
  0xc0   :  { %v223_v42 = vpop.f32.mrf.mxu0 }
  0xc1   :  { %312 = vmatmul.f32.gmra.mxu1 %v223_v42 }
  0xc8   :  { %v225_v43 = vpop.f32.mrf.mxu0 }
  0xc9   :  { %315 = vmatmul.f32.gmra.mxu1 %v225_v43 }
  0xd0   :  { %v228_v44 = vpop.f32.mrf.mxu0 }
  0xd1   :  { %318 = vmatmul.f32.gmra.mxu1 %v228_v44 }
  0xd8   :  { %v230_v45 = vpop.f32.mrf.mxu0 }
  0xd9   :  { %321 = vmatmul.f32.gmra.mxu1 %v230_v45 }
  0xe0   :  { %v233_v46 = vpop.f32.mrf.mxu0 }
  0xe1   :  { %324 = vmatmul.f32.gmra.mxu1 %v233_v46 }
  0xe8   :  { %v235_v47 = vpop.f32.mrf.mxu0 }
  0xe9   :  { %327 = vmatmul.f32.gmra.mxu1 %v235_v47 }
  0xf0   :  { %v238_v48 = vpop.f32.mrf.mxu0 }
  0xf1   :  { %330 = vmatmul.f32.gmra.mxu1 %v238_v48 }
  0xf8   :  { %v240_v49 = vpop.f32.mrf.mxu0 }
  0xf9   :  { %333 = vmatmul.f32.gmra.mxu1 %v240_v49 }
 0x100   :  { %v243_v50 = vpop.f32.mrf.mxu0 }
 0x101   :  { %336 = vmatmul.f32.gmra.mxu1 %v243_v50 }
 0x108   :  { %v245_v51 = vpop.f32.mrf.mxu0 }
 0x109   :  { %339 = vmatmul.f32.gmra.mxu1 %v245_v51 }
 0x110   :  { %v248_v52 = vpop.f32.mrf.mxu0 }
 0x111   :  { %342 = vmatmul.f32.gmra.mxu1 %v248_v52 }
 0x118   :  { %v250_v53 = vpop.f32.mrf.mxu0 }
 0x119   :  { %345 = vmatmul.f32.gmra.mxu1 %v250_v53 }
 0x120   :  { %v253_v54 = vpop.f32.mrf.mxu0 }
 0x121   :  { %348 = vmatmul.f32.gmra.mxu1 %v253_v54 }
 0x128   :  { %v255_v55 = vpop.f32.mrf.mxu0 }
 0x129   :  { %351 = vmatmul.f32.gmra.mxu1 %v255_v55 }
 0x12e   :  { %v307_v56 = vpop.f32.mrf.mxu1 }
 0x12f   :  { %v371_v57 = vmul.f32 0.01, %v307_v56  ;;  %vm355_vm0 = vcmp.gt.f32.partialorder %v307_v56, 0.0 }
 0x131   :  { %v959_v60 = vsel %vm355_vm0, %v307_v56, %v371_v57  ;;  %v751_v56 = vld [vmem:[#allocation8 + $0x38] sm:$0xff]   ;;  %v750_v57 = vld [vmem:[#allocation8 + $0x30] sm:$0xff]  }
 0x136   :  { %v310_v58 = vpop.f32.mrf.mxu1 }
 0x137   :  { %vm356_vm1 = vcmp.gt.f32.partialorder %v310_v58, 0.0  ;;  %v372_v59 = vmul.f32 0.01, %v310_v58 }
 0x139   :  { %v961_v61 = vsel %vm356_vm1, %v310_v58, %v372_v59  ;;  %v737_v58 = vunpack.c.h.bf16 %v751_v56  ;;  %v736_v59 = vunpack.c.l.bf16 %v751_v56 }
 0x13a   :  { %v403_v62 = vpack.c.bf16 %v961_v61, %v959_v60  ;;  %v732_v60 = vunpack.c.l.bf16 %v750_v57 }
 0x13b   :  { %492 = vmatpush.msra.mxu3 %v737_v58 }
 0x13d   :  { %493 = vmatpush.msra.mxu3 %v736_v59 }
 0x13e   :  { %v313_v63 = vpop.f32.mrf.mxu1 }
 0x13f   :  { %v373_v0 = vmul.f32 0.01, %v313_v63  ;;  %vm357_vm2 = vcmp.gt.f32.partialorder %v313_v63, 0.0 }
 0x141   :  { %v965_v3 = vsel %vm357_vm2, %v313_v63, %v373_v0  ;;  %v733_v63 = vunpack.c.h.bf16 %v750_v57  ;;  %v749_v0 = vld [vmem:[#allocation8 + $0x28] sm:$0xff]  }
 0x142   :  { %v729_v61 = vunpack.c.h.bf16 %v749_v0 }
 0x143   :  { %494 = vmatpush.msra.mxu3 %v733_v63 }
 0x145   :  { %495 = vmatpush.msra.mxu3 %v732_v60 }
 0x146   :  { %v316_v1 = vpop.f32.mrf.mxu1 }
 0x147   :  { %vm358_vm3 = vcmp.gt.f32.partialorder %v316_v1, 0.0  ;;  %v374_v2 = vmul.f32 0.01, %v316_v1  ;;  %496 = vmatpush.msra.mxu3 %v729_v61 }
 0x149   :  { %v390_v4 = vsel %vm358_vm3, %v316_v1, %v374_v2  ;;  %v746_v1 = vld [vmem:[#allocation8 + $0x10] sm:$0xff]  }
 0x14a   :  { %v404_v5 = vpack.c.bf16 %v390_v4, %v965_v3  ;;  %v717_v3 = vunpack.c.h.bf16 %v746_v1  ;;  %v745_v4 = vld [vmem:[#allocation8 + $0x8] sm:$0xff]  }
 0x14e   :  { %v319_v6 = vpop.f32.mrf.mxu1 }
 0x14f   :  { %v375_v7 = vmul.f32 0.01, %v319_v6  ;;  %vm359_vm4 = vcmp.gt.f32.partialorder %v319_v6, 0.0 }
 0x151   :  { %v391_v15 = vsel %vm359_vm4, %v319_v6, %v375_v7  ;;  %v713_v6 = vunpack.c.h.bf16 %v745_v4  ;;  %v707_v7 = vld [vmem:[#allocation8] sm:$0xff]  }
 0x156   :  { %v322_v12 = vpop.f32.mrf.mxu1 }
 0x157   :  { %vm360_vm5 = vcmp.gt.f32.partialorder %v322_v12, 0.0  ;;  %v376_v13 = vmul.f32 0.01, %v322_v12 }
 0x159   :  { %v392_v16 = vsel %vm360_vm5, %v322_v12, %v376_v13  ;;  %v712_v12 = vunpack.c.l.bf16 %v745_v4  ;;  %v709_v13 = vunpack.c.h.bf16 %v707_v7 }
 0x15a   :  { %v405_v17 = vpack.c.bf16 %v392_v16, %v391_v15 }
 0x15e   :  { %v325_v18 = vpop.f32.mrf.mxu1 }
 0x15f   :  { %v377_v19 = vmul.f32 0.01, %v325_v18  ;;  %vm361_vm6 = vcmp.gt.f32.partialorder %v325_v18, 0.0 }
 0x161   :  { %v393_v22 = vsel %vm361_vm6, %v325_v18, %v377_v19 }
 0x166   :  { %v328_v20 = vpop.f32.mrf.mxu1 }
 0x167   :  { %vm362_vm7 = vcmp.gt.f32.partialorder %v328_v20, 0.0  ;;  %v378_v21 = vmul.f32 0.01, %v328_v20 }
 0x169   :  { %v394_v23 = vsel %vm362_vm7, %v328_v20, %v378_v21 }
 0x16a   :  { %v406_v24 = vpack.c.bf16 %v394_v23, %v393_v22 }
 0x16e   :  { %v331_v25 = vpop.f32.mrf.mxu1 }
 0x16f   :  { %v379_v50 = vmul.f32 0.01, %v331_v25  ;;  %vm363_vm15 = vcmp.gt.f32.partialorder %v331_v25, 0.0 }
 0x171   :  { %v395_v54 = vsel %vm363_vm15, %v331_v25, %v379_v50 }
 0x176   :  { %v334_v26 = vpop.f32.mrf.mxu1 }
 0x177   :  { %v380_v48 = vmul.f32 0.01, %v334_v26  ;;  %vm364_vm14 = vcmp.gt.f32.partialorder %v334_v26, 0.0 }
 0x179   :  { %v396_v53 = vsel %vm364_vm14, %v334_v26, %v380_v48 }
 0x17a   :  { %v407_v55 = vpack.c.bf16 %v396_v53, %v395_v54 }
 0x17e   :  { %v337_v28 = vpop.f32.mrf.mxu1 }
 0x17f   :  { %v381_v45 = vmul.f32 0.01, %v337_v28  ;;  %vm365_vm13 = vcmp.gt.f32.partialorder %v337_v28, 0.0 }
 0x181   :  { %v397_v51 = vsel %vm365_vm13, %v337_v28, %v381_v45 }
 0x186   :  { %v340_v29 = vpop.f32.mrf.mxu1 }
 0x187   :  { %v382_v43 = vmul.f32 0.01, %v340_v29  ;;  %vm366_vm12 = vcmp.gt.f32.partialorder %v340_v29, 0.0 }
 0x189   :  { %v398_v49 = vsel %vm366_vm12, %v340_v29, %v382_v43 }
 0x18a   :  { %v408_v52 = vpack.c.bf16 %v398_v49, %v397_v51 }
 0x18e   :  { %v343_v30 = vpop.f32.mrf.mxu1 }
 0x18f   :  { %v383_v37 = vmul.f32 0.01, %v343_v30  ;;  %vm367_vm11 = vcmp.gt.f32.partialorder %v343_v30, 0.0 }
 0x191   :  { %v399_v46 = vsel %vm367_vm11, %v343_v30, %v383_v37 }
 0x196   :  { %v346_v31 = vpop.f32.mrf.mxu1 }
 0x197   :  { %v384_v35 = vmul.f32 0.01, %v346_v31  ;;  %vm368_vm10 = vcmp.gt.f32.partialorder %v346_v31, 0.0 }
 0x199   :  { %v400_v44 = vsel %vm368_vm10, %v346_v31, %v384_v35 }
 0x19a   :  { %v409_v47 = vpack.c.bf16 %v400_v44, %v399_v46 }
 0x19e   :  { %v349_v32 = vpop.f32.mrf.mxu1 }
 0x19f   :  { %v385_v33 = vmul.f32 0.01, %v349_v32  ;;  %vm369_vm8 = vcmp.gt.f32.partialorder %v349_v32, 0.0 }
 0x1a1   :  { %v401_v40 = vsel %vm369_vm8, %v349_v32, %v385_v33 }
 0x1a6   :  { %v352_v34 = vpop.f32.mrf.mxu1 }
 0x1a7   :  { %vm370_vm9 = vcmp.gt.f32.partialorder %v352_v34, 0.0  ;;  %v386_v36 = vmul.f32 0.01, %v352_v34 }
 0x1a9   :  { %v402_v41 = vsel %vm370_vm9, %v352_v34, %v386_v36 }
 0x1aa   :  { %v410_v42 = vpack.c.bf16 %v402_v41, %v401_v40 }
 0x1ac   :  { %411 = vmatpush.bf16.msra.mxu2 %v410_v42 }
 0x1b0   :  { %412 = vmatpush.bf16.msra.mxu2 %v409_v47 }
 0x1b4   :  { %413 = vmatpush.bf16.msra.mxu2 %v408_v52 }
 0x1b8   :  { %414 = vmatpush.bf16.msra.mxu2 %v407_v55 }
 0x1bc   :  { %415 = vmatpush.bf16.msra.mxu2 %v406_v24 }
 0x1c0   :  { %416 = vmatpush.bf16.msra.mxu2 %v405_v17 }
 0x1c4   :  { %417 = vmatpush.bf16.msra.mxu2 %v404_v5  ;;  %v716_v5 = vunpack.c.l.bf16 %v746_v1 }
 0x1c8   :  { %418 = vmatpush.bf16.msra.mxu2 %v403_v62 }
 0x1cb   :  { %419 = vmatmul.bf16.vlgmr.msra.gmra.mxu2 %v935_v8  ;;  %v728_v8 = vunpack.c.l.bf16 %v749_v0 }
 0x1cd   :  { %497 = vmatpush.msra.mxu3 %v728_v8 }
 0x1db   :  { %424 = vmatmul.bf16.gmra.mxu2 %v938_v9  ;;  %v748_v9 = vld [vmem:[#allocation8 + $0x20] sm:$0xff]  }
 0x1eb   :  { %429 = vmatmul.bf16.gmra.mxu2 %v941_v10  ;;  %v725_v10 = vunpack.c.h.bf16 %v748_v9 }
 0x1ed   :  { %498 = vmatpush.msra.mxu3 %v725_v10 }
 0x1fb   :  { %434 = vmatmul.bf16.gmra.mxu2 %v944_v11  ;;  %v724_v11 = vunpack.c.l.bf16 %v748_v9 }
 0x1fd   :  { %499 = vmatpush.msra.mxu3 %v724_v11 }
 0x20b   :  { %439 = vmatmul.bf16.gmra.mxu2 %v947_v14  ;;  %v747_v14 = vld [vmem:[#allocation8 + $0x18] sm:$0xff]  }
 0x20c   :  { %v721_v62 = vunpack.c.h.bf16 %v747_v14  ;;  %v720_v2 = vunpack.c.l.bf16 %v747_v14 }
 0x20e   :  { %500 = vmatpush.msra.mxu3 %v721_v62 }
 0x210   :  { %501 = vmatpush.msra.mxu3 %v720_v2 }
 0x212   :  { %502 = vmatpush.msra.mxu3 %v717_v3 }
 0x214   :  { %503 = vmatpush.msra.mxu3 %v716_v5 }
 0x216   :  { %504 = vmatpush.msra.mxu3 %v713_v6 }
 0x218   :  { %505 = vmatpush.msra.mxu3 %v712_v12 }
 0x21a   :  { %506 = vmatpush.msra.mxu3 %v709_v13 }
 0x21b   :  { %444 = vmatmul.bf16.gmra.mxu2 %v950_v27  ;;  %v708_v27 = vunpack.c.l.bf16 %v707_v7 }
 0x21d   :  { %507 = vmatpush.msra.mxu3 %v708_v27 }
 0x22b   :  { %449 = vmatmul.bf16.gmra.mxu2 %v953_v38 }
 0x23b   :  { %454 = vmatmul.bf16.gmra.mxu2 %v956_v39 }
 0x24e   :  { %v420_v15 = vpop.f32.mrf.mxu2 }
 0x24f   :  { %508 = vmatmul.f32.vlgmr.msra.gmra.mxu3 %v420_v15 }
 0x256   :  { %v422_v16 = vpop.f32.mrf.mxu2 }
 0x257   :  { %511 = vmatmul.f32.gmra.mxu3 %v422_v16 }
 0x25e   :  { %v425_v17 = vpop.f32.mrf.mxu2 }
 0x25f   :  { %514 = vmatmul.f32.gmra.mxu3 %v425_v17 }
 0x266   :  { %v427_v18 = vpop.f32.mrf.mxu2 }
 0x267   :  { %517 = vmatmul.f32.gmra.mxu3 %v427_v18 }
 0x26e   :  { %v430_v19 = vpop.f32.mrf.mxu2 }
 0x26f   :  { %520 = vmatmul.f32.gmra.mxu3 %v430_v19 }
 0x276   :  { %v432_v20 = vpop.f32.mrf.mxu2 }
 0x277   :  { %523 = vmatmul.f32.gmra.mxu3 %v432_v20 }
 0x27e   :  { %v435_v21 = vpop.f32.mrf.mxu2 }
 0x27f   :  { %526 = vmatmul.f32.gmra.mxu3 %v435_v21 }
 0x286   :  { %v437_v38 = vpop.f32.mrf.mxu2 }
 0x287   :  { %529 = vmatmul.f32.gmra.mxu3 %v437_v38 }
 0x28e   :  { %v440_v22 = vpop.f32.mrf.mxu2 }
 0x28f   :  { %532 = vmatmul.f32.gmra.mxu3 %v440_v22 }
 0x296   :  { %v442_v23 = vpop.f32.mrf.mxu2 }
 0x297   :  { %535 = vmatmul.f32.gmra.mxu3 %v442_v23 }
 0x29e   :  { %v445_v39 = vpop.f32.mrf.mxu2 }
 0x29f   :  { %538 = vmatmul.f32.gmra.mxu3 %v445_v39 }
 0x2a6   :  { %v447_v24 = vpop.f32.mrf.mxu2 }
 0x2a7   :  { %541 = vmatmul.f32.gmra.mxu3 %v447_v24 }
 0x2ae   :  { %v450_v25 = vpop.f32.mrf.mxu2 }
 0x2af   :  { %544 = vmatmul.f32.gmra.mxu3 %v450_v25 }
 0x2b6   :  { %v452_v26 = vpop.f32.mrf.mxu2 }
 0x2b7   :  { %547 = vmatmul.f32.gmra.mxu3 %v452_v26 }
 0x2be   :  { %v455_v28 = vpop.f32.mrf.mxu2 }
 0x2bf   :  { %550 = vmatmul.f32.gmra.mxu3 %v455_v28 }
 0x2c6   :  { %v457_v29 = vpop.f32.mrf.mxu2 }
 0x2c7   :  { %553 = vmatmul.f32.gmra.mxu3 %v457_v29 }
 0x2d2   :  { %v509_v30 = vpop.f32.mrf.mxu3 }
 0x2d3   :  { %557 = vst [vmem:[#allocation10] sm:$0xff] %v509_v30 }
 0x2da   :  { %v512_v31 = vpop.f32.mrf.mxu3 }
 0x2db   :  { %558 = vst [vmem:[#allocation10 + $0x8] sm:$0xff] %v512_v31 }
 0x2e2   :  { %v515_v32 = vpop.f32.mrf.mxu3 }
 0x2e3   :  { %559 = vst [vmem:[#allocation10 + $0x10] sm:$0xff] %v515_v32 }
 0x2ea   :  { %v518_v33 = vpop.f32.mrf.mxu3 }
 0x2eb   :  { %560 = vst [vmem:[#allocation10 + $0x18] sm:$0xff] %v518_v33 }
 0x2f2   :  { %v521_v34 = vpop.f32.mrf.mxu3 }
 0x2f3   :  { %561 = vst [vmem:[#allocation10 + $0x20] sm:$0xff] %v521_v34 }
 0x2fa   :  { %v524_v35 = vpop.f32.mrf.mxu3 }
 0x2fb   :  { %562 = vst [vmem:[#allocation10 + $0x28] sm:$0xff] %v524_v35 }
 0x302   :  { %v527_v36 = vpop.f32.mrf.mxu3 }
 0x303   :  { %563 = vst [vmem:[#allocation10 + $0x30] sm:$0xff] %v527_v36 }
 0x30a   :  { %v530_v37 = vpop.f32.mrf.mxu3 }
 0x30b   :  { %564 = vst [vmem:[#allocation10 + $0x38] sm:$0xff] %v530_v37 }
 0x312   :  { %v533_v40 = vpop.f32.mrf.mxu3 }
 0x313   :  { %565 = vst [vmem:[#allocation10 + $0x40] sm:$0xff] %v533_v40 }
 0x31a   :  { %v536_v41 = vpop.f32.mrf.mxu3 }
 0x31b   :  { %566 = vst [vmem:[#allocation10 + $0x48] sm:$0xff] %v536_v41 }
 0x322   :  { %v539_v42 = vpop.f32.mrf.mxu3 }
 0x323   :  { %567 = vst [vmem:[#allocation10 + $0x50] sm:$0xff] %v539_v42 }
 0x32a   :  { %v542_v43 = vpop.f32.mrf.mxu3 }
 0x32b   :  { %568 = vst [vmem:[#allocation10 + $0x58] sm:$0xff] %v542_v43 }
 0x332   :  { %v545_v44 = vpop.f32.mrf.mxu3 }
 0x333   :  { %569 = vst [vmem:[#allocation10 + $0x60] sm:$0xff] %v545_v44 }
 0x33a   :  { %v548_v45 = vpop.f32.mrf.mxu3 }
 0x33b   :  { %570 = vst [vmem:[#allocation10 + $0x68] sm:$0xff] %v548_v45 }
 0x342   :  { %v551_v46 = vpop.f32.mrf.mxu3 }
 0x343   :  { %571 = vst [vmem:[#allocation10 + $0x70] sm:$0xff] %v551_v46 }
 0x34a   :  { %v554_v47 = vpop.f32.mrf.mxu3 }
 0x34b   :  { %572 = vst [vmem:[#allocation10 + $0x78] sm:$0xff] %v554_v47 }
 0x34c   :  { %585 = dma.vmem_to_hbm [thread:$0]  %s578_s3, 2048, %s580_s11, [#allocation4], %s896_s12, %s896_s12, %s897_s13  }
 0x34d   :  { %887 = dma.done.wait [#allocation4], 2048  }
 0x34e   :  { %888 = vsyncadd [#allocation4], 4294965248 }
 0x34f   :  { %590 = vsyncpa [#allocation3], 1 }
 0x350   :  { %591 = vsyncpa [#allocation6], 1 }
 0x351   :  { %592 = vsyncpa [#allocation9], 1 }
 0x352   :  { %593 = vsyncpa [#allocation4], 1 }

</bundles_post_ra>
